<compile_context>
chip_gen: v6e
topology: v6e:2x2x1
jax: 0.10.0
libtpu: 0.0.40
codegen_flags: <defaults>
</compile_context>

<pallas_src>
import jax
import jax.numpy as jnp
from jax import lax
from jax.experimental import pallas as pl
from jax.experimental.pallas import tpu as pltpu

MARGIN = 0.9
DEC_W = 0.0005


def _round_up(x, m):
    return ((x + m - 1) // m) * m


def _vmem_capacity_bytes():
    """Per-core VMEM capacity; conservative fallback = v7x's 64 MiB."""
    try:
        info = pltpu.get_tpu_info()
        v = getattr(info, "vmem_capacity_bytes", None)
        if v:
            return int(v)
    except Exception:
        pass
    return 64 << 20


def _num_tensorcores():
    """Best-effort TensorCore count (1 on v5e/v6e, 2 on v7x); safe fallback = 1."""
    try:
        info = pltpu.get_tpu_info()
        for attr in ("num_cores", "core_count", "tensorcore_count", "num_tensorcores"):
            v = getattr(info, attr, None)
            if v:
                return max(1, min(int(v), 8))
    except Exception:
        pass
    try:
        v = getattr(jax.devices()[0], "num_cores", None)
        if v:
            return max(1, min(int(v), 8))
    except Exception:
        pass
    return 1


def _make_kernel(B, C, F, TB, tiles_per_core, need_mask):
    def kernel(tgt_ref, caps_ref, dec_ref, flat_ref, sel_ref, out_ref,
               cap_acc, dec_acc):
        p = pl.program_id(0)          # partial (core) index      -> "parallel"
        t = pl.program_id(1)          # batch tile within partial -> "arbitrary"

        @pl.when(t == 0)
        def _init():
            cap_acc[...] = jnp.zeros_like(cap_acc)
            dec_acc[...] = jnp.zeros_like(dec_acc)

        # ---- capsule squared L2 norms from the lane-dense (TB, C*D) layout ----
        # sel_ref is the constant block-diagonal 0/1 selector (C*D, C), loaded once.
        caps = caps_ref[...].astype(jnp.float32)                          # (TB, C*D)
        sq_norm = jnp.dot(caps * caps, sel_ref[...],
                          preferred_element_type=jnp.float32)             # (TB, C)
        norms = jnp.sqrt(sq_norm)

        # ---- MultiMarginLoss(p=2, margin=0.9) hinge terms for this tile ----
        tgt = tgt_ref[...]                                                # (TB, 1) int32
        cls = lax.broadcasted_iota(jnp.int32, (TB, C), 1)
        onehot = (cls == tgt).astype(jnp.float32)                         # 1 at target class
        x_y = jnp.sum(norms * onehot, axis=-1, keepdims=True)             # (TB, 1)
        hinge = jnp.maximum(0.0, MARGIN - x_y + norms)                    # (TB, C)
        hinge = hinge * hinge * (1.0 - onehot)                            # p=2, exclude j == y

        # ---- decoder MSE squared differences ----
        diff = dec_ref[...].astype(jnp.float32) - flat_ref[...].astype(jnp.float32)
        diff2 = diff * diff                                               # (TB, F)

        if need_mask:
            # Ragged / fully-OOB logical rows: jnp.where (not multiply) so garbage
            # (possibly NaN/inf) in the out-of-bounds region never propagates.
            row = (p * tiles_per_core + t) * TB + lax.broadcasted_iota(
                jnp.int32, (TB, 1), 0)
            valid = row < B
            hinge = jnp.where(valid, hinge, 0.0)
            diff2 = jnp.where(valid, diff2, 0.0)

        # vreg-shaped accumulation (pure VPU adds); cross-lane reduce deferred.
        cap_acc[...] += hinge                                             # (TB, C)
        # MSE partial: per-step reduce is hidden under the HBM DMA (mem-bound).
        dec_acc[...] += jnp.sum(diff2, keepdims=True)                     # (1, 1)

        # ---- finalize: write this partial's weighted contribution once ----
        @pl.when(t == tiles_per_core - 1)
        def _finalize():
            contrib = ((1.0 - DEC_W) / float(B * C)) * jnp.sum(cap_acc[...]) \
                      + (DEC_W / float(B * F)) * dec_acc[...]             # (1, 1)
            # lane-dense, (8,128)-aligned output tile; wrapper reads [p*8, 0]
            out_ref[...] = jnp.broadcast_to(contrib, out_ref.shape)

    return kernel


def total_loss(input_img, target, capsoutput, decoderoutput, *,
               block_b=None, num_partials=None):
    B = input_img.shape[0]
    C, D = capsoutput.shape[-2], capsoutput.shape[-1]
    F = 1
    for s in input_img.shape[1:]:
        F *= s
    CD = C * D

    # Native dtypes (no wrapper f32 casts); lane-dense capsule layout (B, C*D).
    flat = input_img.reshape(B, F)                 # input.view(B, -1)
    caps2d = capsoutput.reshape(B, CD)             # (B, C*D)
    dec = decoderoutput.reshape(B, F)
    tgt = target.astype(jnp.int32).reshape(B, 1)

    # Block-diagonal 0/1 selector (C*D, C): sel[r, c] = 1 iff r // D == c.
    # Built once here and kept VMEM-resident in the kernel (constant index_map).
    rr = jnp.arange(CD, dtype=jnp.int32)[:, None]
    cc = jnp.arange(C, dtype=jnp.int32)[None, :]
    sel = (rr // D == cc).astype(jnp.float32)      # (CD, C)

    caps_it = caps2d.dtype.itemsize
    dec_it = dec.dtype.itemsize
    flat_it = flat.dtype.itemsize

    # Sublane multiple for packed sub-32-bit dtypes (8 f32 / 16 bf16 / 32 int8).
    sub = max(8, *(32 // a.dtype.itemsize for a in (caps2d, dec, flat)))

    # Generation-aware VMEM budget; shrink TB until double-buffered tiles fit.
    cap_bytes = _vmem_capacity_bytes()
    budget = max(16 << 20, cap_bytes - (8 << 20))

    def vmem_need(tb):
        per_buf = tb * (4 + CD * caps_it + F * (dec_it + flat_it))   # one buffer set
        f32_tmp = tb * (CD + 2 * F) * 4                              # in-kernel upcasts/diff
        fixed = tb * C * 4 + CD * C * 4 + 2 * 8 * 128 * 4 + 4        # scratch + sel + out
        return 2 * per_buf + f32_tmp + fixed

    if block_b is None:
        block_b = 1024   # bigger tiles amortize the ~0.35us/step overhead (v7x HBM)
    if B >= sub:
        TB = _round_up(min(int(block_b), B), sub)
        TB = min(TB, (B // sub) * sub)             # keep blocks inside the array
    else:
        TB = B                                     # single full-extent (tiny) block
    while TB > sub and vmem_need(TB) > budget:
        TB = _round_up(max(sub, TB // 2), sub)

    tiles_total = (B + TB - 1) // TB
    if num_partials is None:
        num_partials = _num_tensorcores()          # 1 on v5e/v6e, 2 on v7x
    P = max(1, min(int(num_partials), tiles_total))
    tiles_per_core = (tiles_total + P - 1) // P
    covered = P * tiles_per_core * TB
    need_mask = covered != B

    # Clamp fully out-of-range logical block indices onto the last valid block;
    # their contribution is zeroed by the in-kernel row mask.
    last_blk = tiles_total - 1
    if P * tiles_per_core > tiles_total:
        def row_blk(p, t):
            return jnp.minimum(p * tiles_per_core + t, last_blk)
    else:
        def row_blk(p, t):
            return p * tiles_per_core + t

    kernel = _make_kernel(B, C, F, TB, tiles_per_core, need_mask)

    vmem_limit = int(max(16 << 20,
                         min(cap_bytes - (4 << 20), vmem_need(TB) + (8 << 20))))

    rows = tiles_total * TB
    cost = pl.CostEstimate(
        flops=int(rows * (2 * CD + 2 * CD * C + 8 * C + 3 * F)),
        transcendentals=int(rows * C),
        bytes_accessed=int(B * (4 + CD * caps_it + F * (dec_it + flat_it))
                           + CD * C * 4 + P * 8 * 128 * 4),
    )

    out = pl.pallas_call(
        kernel,
        out_shape=jax.ShapeDtypeStruct((P * 8, 128), jnp.float32),
        grid_spec=pltpu.PrefetchScalarGridSpec(
            num_scalar_prefetch=0,
            grid=(P, tiles_per_core),
            in_specs=[
                pl.BlockSpec((TB, 1), lambda p, t: (row_blk(p, t), 0)),   # target
                pl.BlockSpec((TB, CD), lambda p, t: (row_blk(p, t), 0)),  # caps (B, C*D)
                pl.BlockSpec((TB, F), lambda p, t: (row_blk(p, t), 0)),   # decoder out
                pl.BlockSpec((TB, F), lambda p, t: (row_blk(p, t), 0)),   # flat input
                pl.BlockSpec((CD, C), lambda p, t: (0, 0)),               # selector (resident)
            ],
            out_specs=pl.BlockSpec((8, 128), lambda p, t: (p, 0)),
            scratch_shapes=[pltpu.VMEM((TB, C), jnp.float32),   # hinge accumulator (VPU-only)
                            pltpu.VMEM((1, 1), jnp.float32)],   # MSE running sum
        ),
        compiler_params=pltpu.CompilerParams(
            dimension_semantics=("parallel", "arbitrary"),
            vmem_limit_bytes=vmem_limit,
        ),
        cost_estimate=cost,
    )(tgt, caps2d, dec, flat, sel)

    # Combine the per-core weighted partials (one scalar per (8,128) output tile).
    return jnp.sum(out[0::8, 0])


def reference_total_loss(input_img, target, capsoutput, decoderoutput):
    """Pure-JAX reference matching the PyTorch module."""
    B = input_img.shape[0]
    caps = capsoutput.astype(jnp.float32)
    norms = jnp.sqrt(jnp.sum(caps * caps, axis=-1))            # (B, C)
    C = norms.shape[1]
    x_y = jnp.take_along_axis(norms, target[:, None].astype(jnp.int32), axis=1)
    hinge = jnp.maximum(0.0, MARGIN - x_y + norms) ** 2
    hinge = hinge * (1.0 - jax.nn.one_hot(target, C, dtype=jnp.float32))
    caploss = jnp.sum(hinge) / (B * C)
    flat = input_img.reshape(B, -1).astype(jnp.float32)
    diff = decoderoutput.astype(jnp.float32).reshape(B, -1) - flat
    decloss = jnp.mean(diff * diff)
    return (1.0 - DEC_W) * caploss + DEC_W * decloss


if __name__ == "__main__":
    # Small MNIST-like shapes: B=14 (exercises the in-kernel ragged-tile mask),
    # 1x16x16 images, 10 classes, 16-dim capsules.
    B, Cc, H, W = 14, 1, 16, 16
    NUM_CLASSES, CAPS_DIM = 10, 16
    F = Cc * H * W

    key = jax.random.PRNGKey(0)
    k_in, k_tgt, k_caps, k_dec = jax.random.split(key, 4)

    input_img = jax.random.uniform(k_in, (B, Cc, H, W), dtype=jnp.float32)           # NCHW
    target = jax.random.randint(k_tgt, (B,), 0, NUM_CLASSES, dtype=jnp.int32)
    capsoutput = jax.random.normal(k_caps, (B, NUM_CLASSES, CAPS_DIM), jnp.float32) * 0.2
    decoderoutput = jax.random.uniform(k_dec, (B, F), dtype=jnp.float32)

    ref = reference_total_loss(input_img, target, capsoutput, decoderoutput)

    # block_b=8, num_partials=2 -> grid=(2,1): exercises the per-core partial split
    # AND the masked ragged last tile (14 rows streamed as 2x8-row blocks).
    loss = total_loss(input_img, target, capsoutput, decoderoutput,
                      block_b=8, num_partials=2)
    jax.block_until_ready(loss)
    assert jnp.allclose(loss, ref, rtol=1e-4, atol=1e-6), (float(loss), float(ref))

    # Also run the auto (generation-aware) configuration once.
    loss_auto = total_loss(input_img, target, capsoutput, decoderoutput)
    jax.block_until_ready(loss_auto)
    assert jnp.allclose(loss_auto, ref, rtol=1e-4, atol=1e-6), (float(loss_auto), float(ref))

    print("KERNEL_OK")
</pallas_src>

<mosaic_0001>
module attributes {stable_mosaic.version = 11 : i64} {
  func.func @kernel(%arg0: i32, %arg1: i32, %arg2: memref<8x1xi32, #tpu.memory_space<vmem>>, %arg3: memref<8x160xf32, #tpu.memory_space<vmem>>, %arg4: memref<8x256xf32, #tpu.memory_space<vmem>>, %arg5: memref<8x256xf32, #tpu.memory_space<vmem>>, %arg6: memref<160x10xf32, #tpu.memory_space<vmem>>, %arg7: memref<8x128xf32, #tpu.memory_space<vmem>>, %arg8: memref<8x10xf32, #tpu.memory_space<vmem>>, %arg9: memref<1x1xf32, #tpu.memory_space<vmem>>) attributes {dimension_semantics = [#tpu.dimension_semantics<parallel>, #tpu.dimension_semantics<arbitrary>], iteration_bounds = array<i64: 2, 1>, scalar_prefetch = 0 : i64, scratch_operands = 2 : i64, tpu.core_type = #tpu.core_type<tc>, window_params = [{transform_indices = @transform_0, window_bounds = array<i64: 8, 1>}, {transform_indices = @transform_1, window_bounds = array<i64: 8, 160>}, {transform_indices = @transform_2, window_bounds = array<i64: 8, 256>}, {transform_indices = @transform_3, window_bounds = array<i64: 8, 256>}, {pipeline_mode = #tpu.pipeline_mode<synchronous>, transform_indices = @transform_4, window_bounds = array<i64: 160, 10>}, {transform_indices = @transform_5, window_bounds = array<i64: 8, 128>}]} {
    %c0_i32 = arith.constant 0 : i32
    %0 = arith.cmpi eq, %arg1, %c0_i32 : i32
    %1 = arith.extui %0 : i1 to i32
    %c0_i32_0 = arith.constant 0 : i32
    %2 = arith.cmpi ne, %1, %c0_i32_0 : i32
    scf.if %2 {
      %cst_27 = arith.constant 0.000000e+00 : f32
      %61 = vector.broadcast %cst_27 : f32 to vector<8x10xf32>
      %c0_28 = arith.constant 0 : index
      %c0_29 = arith.constant 0 : index
      %62 = vector.load %arg8[%c0_28, %c0_29] : memref<8x10xf32, #tpu.memory_space<vmem>>, vector<8x10xf32>
      tpu.vector_store %arg8[%c0_28, %c0_29], %61 {strides = array<i32>} : memref<8x10xf32, #tpu.memory_space<vmem>>, vector<8x10xf32>,
      %cst_30 = arith.constant 0.000000e+00 : f32
      %63 = vector.broadcast %cst_30 : f32 to vector<1x1xf32>
      %c0_31 = arith.constant 0 : index
      %c0_32 = arith.constant 0 : index
      %64 = vector.load %arg9[%c0_31, %c0_32] : memref<1x1xf32, #tpu.memory_space<vmem>>, vector<1x1xf32>
      tpu.vector_store %arg9[%c0_31, %c0_32], %63 {strides = array<i32>} : memref<1x1xf32, #tpu.memory_space<vmem>>, vector<1x1xf32>,
    } else {
    }
    %c0 = arith.constant 0 : index
    %c0_1 = arith.constant 0 : index
    %3 = vector.load %arg3[%c0, %c0_1] : memref<8x160xf32, #tpu.memory_space<vmem>>, vector<8x160xf32>
    %4 = arith.mulf %3, %3 : vector<8x160xf32>
    %c0_2 = arith.constant 0 : index
    %c0_3 = arith.constant 0 : index
    %5 = vector.load %arg6[%c0_2, %c0_3] : memref<160x10xf32, #tpu.memory_space<vmem>>, vector<160x10xf32>
    %cst = arith.constant dense<0.000000e+00> : vector<8x10xf32>
    %6 = tpu.matmul %4, %5, %cst {dimension_numbers = #tpu.dot_dimension_numbers<[1], [0], [0], [1], [0, 0, 1, 1], [], []>} : vector<8x160xf32>, vector<160x10xf32>, vector<8x10xf32> -> vector<8x10xf32>
    %7 = math.sqrt %6 : vector<8x10xf32>
    %c0_4 = arith.constant 0 : index
    %c0_5 = arith.constant 0 : index
    %8 = vector.load %arg2[%c0_4, %c0_5] : memref<8x1xi32, #tpu.memory_space<vmem>>, vector<8x1xi32>
    %9 = tpu.iota {dimensions = array<i32: 1>} : vector<8x10xi32>
    %10 = vector.broadcast %8 : vector<8x1xi32> to vector<8x10xi32>
    %11 = arith.cmpi eq, %9, %10 : vector<8x10xi32>
    %12 = arith.extui %11 : vector<8x10xi1> to vector<8x10xi32>
    %13 = arith.sitofp %12 : vector<8x10xi32> to vector<8x10xf32>
    %14 = arith.mulf %7, %13 : vector<8x10xf32>
    %cst_6 = arith.constant dense<0.000000e+00> : vector<8xf32>
    %15 = vector.multi_reduction <add>, %14, %cst_6 [1] : vector<8x10xf32> to vector<8xf32>
    %16 = vector.shape_cast %15 : vector<8xf32> to vector<8x1xf32>
    %cst_7 = arith.constant 0.899999976 : f32
    %17 = vector.broadcast %cst_7 : f32 to vector<8x1xf32>
    %18 = arith.subf %17, %16 : vector<8x1xf32>
    %19 = vector.broadcast %18 : vector<8x1xf32> to vector<8x10xf32>
    %20 = arith.addf %19, %7 : vector<8x10xf32>
    %cst_8 = arith.constant 0.000000e+00 : f32
    %21 = vector.broadcast %cst_8 : f32 to vector<8x10xf32>
    %22 = arith.maximumf %21, %20 : vector<8x10xf32>
    %23 = arith.mulf %22, %22 : vector<8x10xf32>
    %cst_9 = arith.constant 1.000000e+00 : f32
    %24 = vector.broadcast %cst_9 : f32 to vector<8x10xf32>
    %25 = arith.subf %24, %13 : vector<8x10xf32>
    %26 = arith.mulf %23, %25 : vector<8x10xf32>
    %c0_10 = arith.constant 0 : index
    %c0_11 = arith.constant 0 : index
    %27 = vector.load %arg4[%c0_10, %c0_11] : memref<8x256xf32, #tpu.memory_space<vmem>>, vector<8x256xf32>
    %c0_12 = arith.constant 0 : index
    %c0_13 = arith.constant 0 : index
    %28 = vector.load %arg5[%c0_12, %c0_13] : memref<8x256xf32, #tpu.memory_space<vmem>>, vector<8x256xf32>
    %29 = arith.subf %27, %28 : vector<8x256xf32>
    %30 = arith.mulf %29, %29 : vector<8x256xf32>
    %c1_i32 = arith.constant 1 : i32
    %31 = arith.muli %arg0, %c1_i32 : i32
    %32 = arith.addi %31, %arg1 : i32
    %c8_i32 = arith.constant 8 : i32
    %33 = arith.muli %32, %c8_i32 : i32
    %34 = tpu.iota {dimensions = array<i32: 0>} : vector<8x1xi32>
    %35 = vector.broadcast %33 : i32 to vector<8x1xi32>
    %36 = arith.addi %35, %34 : vector<8x1xi32>
    %c14_i32 = arith.constant 14 : i32
    %37 = vector.broadcast %c14_i32 : i32 to vector<8x1xi32>
    %38 = arith.cmpi slt, %36, %37 : vector<8x1xi32>
    %cst_14 = arith.constant 0.000000e+00 : f32
    %39 = vector.shape_cast %38 : vector<8x1xi1> to vector<8x1xi1>
    %40 = vector.broadcast %39 : vector<8x1xi1> to vector<8x10xi1>
    %41 = vector.broadcast %cst_14 : f32 to vector<8x10xf32>
    %42 = arith.select %40, %26, %41 : vector<8x10xi1>, vector<8x10xf32>
    %cst_15 = arith.constant 0.000000e+00 : f32
    %43 = vector.shape_cast %38 : vector<8x1xi1> to vector<8x1xi1>
    %44 = vector.broadcast %43 : vector<8x1xi1> to vector<8x256xi1>
    %45 = vector.broadcast %cst_15 : f32 to vector<8x256xf32>
    %46 = arith.select %44, %30, %45 : vector<8x256xi1>, vector<8x256xf32>
    %c0_16 = arith.constant 0 : index
    %c0_17 = arith.constant 0 : index
    %47 = vector.load %arg8[%c0_16, %c0_17] : memref<8x10xf32, #tpu.memory_space<vmem>>, vector<8x10xf32>
    %48 = arith.addf %47, %42 : vector<8x10xf32>
    %c0_18 = arith.constant 0 : index
    %c0_19 = arith.constant 0 : index
    %49 = vector.load %arg8[%c0_18, %c0_19] : memref<8x10xf32, #tpu.memory_space<vmem>>, vector<8x10xf32>
    tpu.vector_store %arg8[%c0_18, %c0_19], %48 {strides = array<i32>} : memref<8x10xf32, #tpu.memory_space<vmem>>, vector<8x10xf32>,
    %c0_20 = arith.constant 0 : index
    %c0_21 = arith.constant 0 : index
    %50 = vector.load %arg9[%c0_20, %c0_21] : memref<1x1xf32, #tpu.memory_space<vmem>>, vector<1x1xf32>
    %51 = vector.shape_cast %46 : vector<8x256xf32> to vector<1x8x256xf32>
    %cst_22 = arith.constant dense<0.000000e+00> : vector<1xf32>
    %52 = vector.multi_reduction <add>, %51, %cst_22 [1, 2] : vector<1x8x256xf32> to vector<1xf32>
    %53 = vector.shape_cast %52 : vector<1xf32> to vector<1x1x1xf32>
    %54 = vector.extract %53[0, 0, 0] : f32 from vector<1x1x1xf32>
    %55 = vector.broadcast %54 : f32 to vector<1x1xf32>
    %56 = arith.addf %50, %55 : vector<1x1xf32>
    %c0_23 = arith.constant 0 : index
    %c0_24 = arith.constant 0 : index
    %57 = vector.load %arg9[%c0_23, %c0_24] : memref<1x1xf32, #tpu.memory_space<vmem>>, vector<1x1xf32>
    tpu.vector_store %arg9[%c0_23, %c0_24], %56 {strides = array<i32>} : memref<1x1xf32, #tpu.memory_space<vmem>>, vector<1x1xf32>,
    %c0_i32_25 = arith.constant 0 : i32
    %58 = arith.cmpi eq, %arg1, %c0_i32_25 : i32
    %59 = arith.extui %58 : i1 to i32
    %c0_i32_26 = arith.constant 0 : i32
    %60 = arith.cmpi ne, %59, %c0_i32_26 : i32
    scf.if %60 {
      %c0_27 = arith.constant 0 : index
      %c0_28 = arith.constant 0 : index
      %61 = vector.load %arg8[%c0_27, %c0_28] : memref<8x10xf32, #tpu.memory_space<vmem>>, vector<8x10xf32>
      %62 = vector.shape_cast %61 : vector<8x10xf32> to vector<1x8x10xf32>
      %cst_29 = arith.constant dense<0.000000e+00> : vector<1xf32>
      %63 = vector.multi_reduction <add>, %62, %cst_29 [1, 2] : vector<1x8x10xf32> to vector<1xf32>
      %64 = vector.shape_cast %63 : vector<1xf32> to vector<1x1x1xf32>
      %65 = vector.extract %64[0, 0, 0] : f32 from vector<1x1x1xf32>
      %cst_30 = arith.constant 0.00713928556 : f32
      %66 = arith.mulf %cst_30, %65 : f32
      %c0_31 = arith.constant 0 : index
      %c0_32 = arith.constant 0 : index
      %67 = vector.load %arg9[%c0_31, %c0_32] : memref<1x1xf32, #tpu.memory_space<vmem>>, vector<1x1xf32>
      %cst_33 = arith.constant 1.39508927E-7 : f32
      %68 = vector.broadcast %cst_33 : f32 to vector<1x1xf32>
      %69 = arith.mulf %68, %67 : vector<1x1xf32>
      %70 = vector.broadcast %66 : f32 to vector<1x1xf32>
      %71 = arith.addf %70, %69 : vector<1x1xf32>
      %72 = vector.shape_cast %71 : vector<1x1xf32> to vector<1x1xf32>
      %73 = vector.broadcast %72 : vector<1x1xf32> to vector<8x128xf32>
      %c0_34 = arith.constant 0 : index
      %c0_35 = arith.constant 0 : index
      %74 = vector.load %arg7[%c0_34, %c0_35] : memref<8x128xf32, #tpu.memory_space<vmem>>, vector<8x128xf32>
      tpu.vector_store %arg7[%c0_34, %c0_35], %73 {strides = array<i32>} : memref<8x128xf32, #tpu.memory_space<vmem>>, vector<8x128xf32>,
    } else {
    }
    return
  }
  func.func @transform_0(%arg0: i32, %arg1: i32) -> (i32, i32) {
    %c1_i32 = arith.constant 1 : i32
    %0 = arith.muli %arg0, %c1_i32 : i32
    %1 = arith.addi %0, %arg1 : i32
    %c0_i32 = arith.constant 0 : i32
    %c0_i32_0 = arith.constant 0 : i32
    return %1, %c0_i32 : i32, i32
  }
  func.func @transform_1(%arg0: i32, %arg1: i32) -> (i32, i32) {
    %c1_i32 = arith.constant 1 : i32
    %0 = arith.muli %arg0, %c1_i32 : i32
    %1 = arith.addi %0, %arg1 : i32
    %c0_i32 = arith.constant 0 : i32
    %c0_i32_0 = arith.constant 0 : i32
    return %1, %c0_i32 : i32, i32
  }
  func.func @transform_2(%arg0: i32, %arg1: i32) -> (i32, i32) {
    %c1_i32 = arith.constant 1 : i32
    %0 = arith.muli %arg0, %c1_i32 : i32
    %1 = arith.addi %0, %arg1 : i32
    %c0_i32 = arith.constant 0 : i32
    %c0_i32_0 = arith.constant 0 : i32
    return %1, %c0_i32 : i32, i32
  }
  func.func @transform_3(%arg0: i32, %arg1: i32) -> (i32, i32) {
    %c1_i32 = arith.constant 1 : i32
    %0 = arith.muli %arg0, %c1_i32 : i32
    %1 = arith.addi %0, %arg1 : i32
    %c0_i32 = arith.constant 0 : i32
    %c0_i32_0 = arith.constant 0 : i32
    return %1, %c0_i32 : i32, i32
  }
  func.func @transform_4(%arg0: i32, %arg1: i32) -> (i32, i32) {
    %c0_i32 = arith.constant 0 : i32
    %c0_i32_0 = arith.constant 0 : i32
    %c0_i32_1 = arith.constant 0 : i32
    return %c0_i32, %c0_i32_0 : i32, i32
  }
  func.func @transform_5(%arg0: i32, %arg1: i32) -> (i32, i32) {
    %c0_i32 = arith.constant 0 : i32
    %c0_i32_0 = arith.constant 0 : i32
    return %arg0, %c0_i32 : i32, i32
  }
}

</mosaic_0001>

<bundles_post_ra>
// kernel: tpu_custom_call.1
= control target key start
LH: loop header
LB: loop body
LE: loop exit
PB: predicated region body
PF: predicated region fallthrough
CT: control target
= control target key end

     0   :  { %10 = vsyncpa [#allocation5], 0  ;;  %s1047_s0 = inlined_call_operand.vmem [shape: s32[14,1], index: 0, kind: input, shape index: {}]   ;;  %s1048_s1 = inlined_call_operand.vmem [shape: f32[14,160], index: 1, kind: input, shape index: {}]   ;;  %s1049_s2 = inlined_call_operand.vmem [shape: f32[14,256], index: 2, kind: input, shape index: {}]   ;;  %s1050_s3 = inlined_call_operand.vmem [shape: f32[14,256], index: 3, kind: input, shape index: {}]   ;;  %s1051_s4 = inlined_call_operand.vmem [shape: f32[160,10], index: 4, kind: input, shape index: {}]   ;;  %s1052_s5 = inlined_call_operand.hbm [shape: f32[16,128], index: 5, kind: output, shape index: {}]  }
   0x1   :  { %12 = vsyncpa [#allocation5 + $0x1], 0  ;;  %s836_s18 = smov 0   ;;  %s838_s19 = smov 0  }
   0x2   :  { %s840_s20 = smov 0   ;;  %s842_s21 = smov 0  }
   0x3   :  { %s844_s22 = smov 0   ;;  %s846_s23 = smov 0  }
   0x4 LB: > { %s637_s24 = sadd.s32 4294967295, %s801_s23   ;;  %s638_s25 = sadd.s32 4294967294, %s801_s23   ;;  %s801_s23 = sphi %s846_s23, %s18_s23   ;;  %s797_s22 = sphi %s844_s22, %s1059_s22   ;;  %s793_s21 = sphi %s842_s21, %s1058_s21   ;;  %s789_s20 = sphi %s840_s20, %s1057_s20   ;;  %s785_s19 = sphi %s838_s19, %s1056_s19   ;;  %s781_s18 = sphi %s836_s18, %s1055_s18  }
   0x5   : > { %s30_s26 = sadd.s32 1, %s797_s22  ;;  %s170_s27 = sadd.s32 1, %s789_s20 }
   0x6   : > { %p32_p0 = scmp.ge.s32.totalorder %s30_s26, 2  ;;  %p180_p1 = scmp.ne.s32.totalorder %s789_s20, %s785_s19 }
   0x7   : > { %p181_p2 = scmp.eq.s32.totalorder %s637_s24, 1  ;;  %p186_p3 = scmp.ne.s32.totalorder %s785_s19, %s781_s18 }
   0x8   : > { %s1061_s26 = smov (%p32_p0, %s30_s26), 0  ;;  %p187_p5 = scmp.eq.s32.totalorder %s638_s25, 1 }
   0x9   : > { %p876_p4 = por %p181_p2, %p180_p1  ;;  %s167_s29 = ssub.s32 %s797_s22, %s1061_s26 }
   0xa   : > { %p641_p6 = scmp.ge.s32.totalorder %s801_s23, 1  ;;  %p168_p7 = scmp.eq.s32.totalorder %s167_s29, 0 }
   0xb   : > { %p883_p8 = por %p187_p5, %p186_p3  ;;  %p247_p9 = scmp.lt.s32.totalorder %s801_s23, 3 }
   0xc   : > { %s889_s6 = scalar_select %p168_p7, %s789_s20, %s170_s27  }
   0xd   : > { %p248_p10 = pnand %p641_p6, %p247_p9 }
   0xe   : > { %p294_p11 = scmp.lt.s32.totalorder (!%p248_p10), %s793_s21, 1  ;;  %s652_s7 = sshll.u32 (!%p248_p10), %s793_s21, 3 }
   0xf   : > { %251 = sbr.rel (%p248_p10) target bundleno = 779 (0x30b), region = 40  ;;  %s290_s10 = sand.u32 (!%p248_p10), 1, %s785_s19  }
  0x10   : > { %s521_s24 = scalar_lea.sflag (!%p248_p10), [#allocation5], %s290_s10 }
  0x14   : > { %v347_v0 = vld [vmem:[%s1051_s4 + $0x78] sm:$0xff]  ;;  %v803_v1 = vmov 0.0   ;;  %v346_v2 = vld [vmem:[%s1051_s4 + $0x70] sm:$0xff]  ;;  %s295_s11 = scalar_select %p294_p11, %s793_s21, 1  ;;  %v804_v3 = vmov 0   ;;  %v345_v4 = vld [vmem:[%s1051_s4 + $0x68] sm:$0xff]  ;;  %v434_v29 = vlaneseq  ;;  %v465_v46 = vstv %s652_s7 }
  0x15   : > { %356 = vmatprep.subr.mxu0 %v803_v1  ;;  %721 = vset.pattern.permute.xlu0 %v804_v3  ;;  %v344_v5 = vld [vmem:[%s1051_s4 + $0x60] sm:$0xff]  ;;  %v343_v6 = vld [vmem:[%s1051_s4 + $0x58] sm:$0xff]  ;;  %vm352_vm0 = vcmask 261120   ;;  %v342_v10 = vld [vmem:[%s1051_s4 + $0x50] sm:$0xff]  ;;  %vm324_vm1 = vcmask 80896   ;;  %vm326_vm6 = vcmask 0  }
  0x16   : > { %357 = vmatpush1.msra.mxu0 %v347_v0  ;;  %722 = vset.pattern.permute.xlu1 %v804_v3  ;;  %s904_s14 = sshll.u32 %s295_s11, 4  ;;  %s643_s15 = sshll.u32 %s295_s11, 3  ;;  %v341_v11 = vld [vmem:[%s1051_s4 + $0x48] sm:$0xff]  ;;  %v340_v12 = vld [vmem:[%s1051_s4 + $0x40] sm:$0xff]  ;;  %v339_v13 = vld [vmem:[%s1051_s4 + $0x38] sm:$0xff]  ;;  %325 = vst.msk [vmem:[#allocation2] sm:$0xff] %vm324_vm1, %v803_v1 }
  0x17   : > { %358 = vmatprep.subr.mxu0 %v803_v1  ;;  %s914_s27 = scalar_lea.vmem %s1048_s1, %s904_s14  ;;  %s297_s8 = scalar_lea.vmem %s1047_s0, %s643_s15  ;;  %v338_v14 = vld [vmem:[%s1051_s4 + $0x30] sm:$0xff]  ;;  %v337_v15 = vld [vmem:[%s1051_s4 + $0x28] sm:$0xff]  ;;  %v336_v16 = vld [vmem:[%s1051_s4 + $0x20] sm:$0xff]  ;;  %v435_v30 = vand.u32 127, %v434_v29  ;;  %v464_v43 = vshrl.u32 %v434_v29, 7 }
  0x18   : > { %359 = vmatpush1.msra.mxu0 %v346_v2  ;;  %v329_v7 = vld [vmem:[%s914_s27 + $0x8] sm:$0xff]  ;;  %v433_v8 = vld [vmem:[%s297_s8] sm:$0xff]  ;;  %v335_v17 = vld [vmem:[%s1051_s4 + $0x18] sm:$0xff]  ;;  %s311_s17 = scalar_lea.vmem %s1049_s2, %s904_s14  ;;  %s318_s29 = scalar_lea.vmem %s1050_s3, %s904_s14  ;;  %327 = vst.msk [vmem:[#allocation3] sm:$0x1] %vm326_vm6, %v803_v1 }
  0x19   : > { %360 = vmatprep.subr.mxu0 %v803_v1  ;;  %v331_v9 = vmul.f32 %v329_v7, %v329_v7  ;;  %437 = vperm.xlu0 %721, %v433_v8   ;;  %v334_v18 = vld [vmem:[%s1051_s4 + $0x10] sm:$0xff]  ;;  %v333_v19 = vld [vmem:[%s1051_s4 + $0x8] sm:$0xff]  ;;  %v332_v20 = vld [vmem:[%s1051_s4] sm:$0xff]  ;;  %v466_v48 = vadd.s32 %v465_v46, %v464_v43  ;;  %s642_s11 = sshll.u32 %s290_s10, 3  ;;  %s654_s15 = sshll.u32 %s793_s21, 7 }
  0x1a   : > { %361 = vmatpush1.msra.mxu0 %v345_v4  ;;  %v351_v21 = vld [vmem:[%s1051_s4 + $0x98] sm:$0xff]  ;;  %v350_v22 = vld [vmem:[%s1051_s4 + $0x90] sm:$0xff]  ;;  %v328_v23 = vld [vmem:[%s914_s27] sm:$0xff]  ;;  %s292_s12 = scalar_lea.vmem [#allocation4], %s642_s11 }
  0x1b   : > { %362 = vmatprep.subr.mxu0 %v803_v1  ;;  %650 = vmatprep.mubr.msk.f32.mxu0 %vm352_vm0, %v331_v9  ;;  %v349_v24 = vld [vmem:[%s1051_s4 + $0x88] sm:$0xff]  ;;  %v348_v25 = vld [vmem:[%s1051_s4 + $0x80] sm:$0xff]  ;;  %v330_v26 = vmul.f32 %v328_v23, %v328_v23  ;;  %vm467_vm5 = vcmp.lt.s32.totalorder %v466_v48, 14  ;;  %s534_s13 = sshll.u32 %s292_s12, 4  ;;  %s1004_s13 = int_to_ptr.vmem [resolvable:$true] %s534_s13 }
  0x1c   : > { %363 = vmatpush1.msra.mxu0 %v344_v5  ;;  %v453_v40 = vld [vmem:[%s311_s17] sm:$0xff]  ;;  %v454_v41 = vld [vmem:[%s311_s17 + $0x8] sm:$0xff]  ;;  %s532_s17 = scalar_lea.hbm %s1052_s5, %s654_s15  ;;  %s725_s25 = scalar_lea.vmem %s1004_s13, 128 }
  0x1d   : > { %364 = vmatprep.subr.mxu0 %v803_v1  ;;  %v455_v42 = vld [vmem:[%s318_s29] sm:$0xff]  ;;  %v456_v44 = vld [vmem:[%s318_s29 + $0x8] sm:$0xff]  ;;  %p726_p12 = scmp.ne.s32.totalorder %s1004_s13, %s725_s25  ;;  %s805_s29 = smov [#allocation4]  }
  0x1e   : > { %365 = vmatpush1.msra.mxu0 %v343_v6  ;;  %v457_v45 = vsub.f32 %v453_v40, %v455_v42  ;;  %v458_v47 = vsub.f32 %v454_v41, %v456_v44  ;;  %v473_v61 = vld [vmem:[#allocation2] sm:$0xff]  ;;  %s729_s7 = sshll.u32 %s805_s29, 4  ;;  %s730_s7 = int_to_ptr.vmem [resolvable:$false] %s729_s7 }
  0x1f   : > { %366 = vmatprep.subr.mxu0 %v803_v1  ;;  %p727_p13 = pnand %p726_p12, %p876_p4  ;;  %s731_s21 = scalar_lea.vmem %s730_s7, 256 }
  0x20   : > { %367 = vmatpush1.msra.mxu0 %v342_v10  ;;  %v459_v49 = vmul.f32 %v457_v45, %v457_v45  ;;  %v460_v50 = vmul.f32 %v458_v47, %v458_v47  ;;  %v476_v10 = vld [vmem:[#allocation3] sm:$0x1]  ;;  %p732_p1 = scmp.lt.s32.totalorder %s1004_s13, %s730_s7  ;;  %p733_p2 = scmp.lt.s32.totalorder %s731_s21, %s725_s25 }
  0x21   : > { %368 = vmatprep.subr.mxu0 %v803_v1  ;;  %p728_p0 = pneg %p727_p13 }
  0x22   : > { %369 = vmatpush1.msra.mxu0 %v341_v11  ;;  %v471_v51 = vsel %vm467_vm5, %v459_v49, 0.0  ;;  %v472_v52 = vsel %vm467_vm5, %v460_v50, 0.0  ;;  %p734_p3 = por %p733_p2, %p732_p1 }
  0x23   : > { %370 = vmatprep.subr.mxu0 %v803_v1  ;;  %v477_v53 = vadd.f32 %v472_v52, %v471_v51 }
  0x24   : > { %371 = vmatpush1.msra.mxu0 %v340_v12  ;;  %p735_p5 = pnand %p734_p3, %p728_p0 }
  0x25   : > { %372 = vmatprep.subr.mxu0 %v803_v1  ;;  %478 = vadd.xlane.f32.xlu1 %v477_v53 }
  0x26   : > { %373 = vmatpush1.msra.mxu0 %v339_v13 }
  0x27   : > { %374 = vmatprep.subr.mxu0 %v803_v1 }
  0x28   : > { %375 = vmatpush1.msra.mxu0 %v338_v14 }
  0x29   : > { %376 = vmatprep.subr.mxu0 %v803_v1 }
  0x2a   : > { %377 = vmatpush1.msra.mxu0 %v337_v15 }
  0x2b   : > { %378 = vmatprep.subr.mxu0 %v803_v1 }
  0x2c   : > { %379 = vmatpush1.msra.mxu0 %v336_v16 }
  0x2d   : > { %380 = vmatprep.subr.mxu0 %v803_v1 }
  0x2e   : > { %381 = vmatpush1.msra.mxu0 %v335_v17 }
  0x2f   : > { %382 = vmatprep.subr.mxu0 %v803_v1 }
  0x30   : > { %383 = vmatpush1.msra.mxu0 %v334_v18 }
  0x31   : > { %384 = vmatprep.subr.mxu0 %v803_v1 }
  0x32   : > { %385 = vmatpush1.msra.mxu0 %v333_v19 }
  0x33   : > { %386 = vmatprep.subr.mxu0 %v803_v1 }
  0x34   : > { %387 = vmatpush1.msra.mxu0 %v332_v20 }
  0x35   : > { %412 = vmatprep.subr.mxu0 %v803_v1 }
  0x36   : > { %413 = vmatpush2.msra.mxu0 %v351_v21 }
  0x37   : > { %414 = vmatprep.subr.mxu0 %v803_v1 }
  0x38   : > { %415 = vmatpush2.msra.mxu0 %v350_v22 }
  0x39   : > { %416 = vmatprep.subr.mxu0 %v803_v1 }
  0x3a   : > { %417 = vmatpush2.msra.mxu0 %v349_v24 }
  0x3b   : > { %418 = vmatprep.subr.mxu0 %v803_v1 }
  0x3c   : > { %419 = vmatpush2.msra.mxu0 %v348_v25 }
  0x3d   : > { %421 = vmatmul.mubr.f32.vlgmr.msra.gmra.mxu0 %v330_v26 }
  0x94   : > { %v438_v31 = vpop.permute.xlu0 %437 }
  0x95   : > { %vm439_vm2 = vcmp.eq.s32.totalorder %v435_v30, %v438_v31 }
  0x96   : > { %v651_v34 = vsel %vm439_vm2, 1.0, %v803_v1  ;;  %v513_v1 = vsub.s32 0, %v464_v43 }
  0x97   : > { %v451_v58 = vsub.f32 1.0, %v651_v34 }
  0xae   : > { %v479_v0 = vpop.xlane.xlu1 %478 }
  0xaf   : > { %v480_v2 = vrot.slane %v479_v0, 4 }
  0xb1   : > { %v481_v3 = vadd.f32 %v480_v2, %v479_v0 }
  0xb3   : > { %v482_v6 = vrot.slane %v481_v3, 2 }
  0xb5   : > { %v483_v7 = vadd.f32 %v482_v6, %v481_v3 }
  0xb7   : > { %v484_v8 = vrot.slane %v483_v7, 1 }
  0xb9   : > { %v485_v9 = vadd.f32 %v484_v8, %v483_v7 }
  0xbb   : > { %660 = vpush %v485_v9 }
  0xec   : > { %s661_s14 = spop %660 }
  0xed   : > { %v487_v11 = vstv %s661_s14 }
  0xee   : > { %v488_v12 = vadd.f32 %v487_v11, %v476_v10 }
  0xf0   : > { %490 = vst.msk [vmem:[#allocation3] sm:$0x1] %vm326_vm6, %v488_v12 }
  0xf7   : > { %v506_v20 = vld [vmem:[#allocation3] sm:$0x1] }
  0xf8   : > { %v507_v21 = vmul.f32 1.3950893e-07, %v506_v20 }
  0xfd   : > { %v422_v27 = vpop.f32.mrf.mxu0 }
  0xfe   : > { %723 = vrsqrt.f32 %v422_v27  ;;  %vm428_vm3 = vcmp.eq.f32.partialorder %v422_v27, inf  ;;  %v431_v35 = vand.u32 2147483648, %v422_v27  ;;  %vm430_vm4 = vcmp.eq.f32.partialorder %v422_v27, 0.0 }
  0xff   : > { %v424_v28 = vpop.f32.mrf.mxu0 }
 0x10b   : > { %v724_v32 = vpop.eup %723 }
 0x10c   : > { %v427_v33 = vmul.f32 %v724_v32, %v422_v27 }
 0x10e   : > { %v429_v36 = vsel %vm428_vm3, %v422_v27, %v427_v33 }
 0x10f   : > { %v432_v37 = vsel %vm430_vm4, %v431_v35, %v429_v36 }
 0x110   : > { %v442_v38 = vmul.f32 %v651_v34, %v432_v37 }
 0x112   : > { %v444_v39 = vsel %vm324_vm1, %v442_v38, 0.0 }
 0x113   : > { %445 = vadd.xlane.f32.xlu0 %v444_v39 }
 0x19c   : > { %v446_v54 = vpop.xlane.xlu0 %445 }
 0x19d   : > { %v447_v55 = vsub.f32 0.9, %v446_v54 }
 0x19f   : > { %v448_v56 = vadd.f32 %v447_v55, %v432_v37 }
 0x1a1   : > { %v449_v57 = vmax.f32 %v448_v56, 0.0 }
 0x1a3   : > { %v450_v59 = vmul.f32 %v449_v57, %v449_v57 }
 0x1a5   : > { %v452_v60 = vmul.f32 %v451_v58, %v450_v59 }
 0x1a7   : > { %v470_v62 = vsel %vm467_vm5, %v452_v60, 0.0 }
 0x1a8   : > { %v474_v63 = vadd.f32 %v473_v61, %v470_v62 }
 0x1aa   : > { %475 = vst.msk [vmem:[#allocation2] sm:$0xff] %vm324_vm1, %v474_v63 }
 0x1b1   : > { %v494_v4 = vld [vmem:[#allocation2] sm:$0xff] }
 0x1b2   : > { %v495_v5 = vsel %vm324_vm1, %v494_v4, 0.0 }
 0x1b3   : > { %496 = vadd.xlane.f32.xlu1 %v495_v5 }
 0x23c   : > { %v497_v13 = vpop.xlane.xlu1 %496 }
 0x23d   : > { %v498_v14 = vrot.slane %v497_v13, 4 }
 0x23f   : > { %v499_v15 = vadd.f32 %v498_v14, %v497_v13 }
 0x241   : > { %v500_v16 = vrot.slane %v499_v15, 2 }
 0x243   : > { %v501_v17 = vadd.f32 %v500_v16, %v499_v15 }
 0x245   : > { %v502_v18 = vrot.slane %v501_v17, 1 }
 0x247   : > { %v503_v19 = vadd.f32 %v502_v18, %v501_v17 }
 0x249   : > { %662 = vpush %v503_v19 }
 0x27a   : > { %s663_s8 = spop %662 }
 0x27b   : > { %s505_s9 = smul.f32 0.0071392856, %s663_s8 }
 0x27d   : > { %v508_v22 = vstv %s505_s9 }
 0x27e   : > { %v509_v23 = vadd.f32 %v508_v22, %v507_v21 }
 0x280   : > { %v514_v24 = vrot.slane %v509_v23, %v513_v1 }
 0x282   : > { %516 = vperm.xlu1 %722, %v514_v24  }
 0x2fd   : > { %v517_v25 = vpop.permute.xlu1 %516 }
 0x2fe   : > { %519 = vst [vmem:[%s292_s12] sm:$0xff] %v517_v25 }
 0x2ff   : > { %738 = shalt.err (!%p735_p5)
}
 0x300   : > { %s739_s14 = scalar_lea.hbm %s532_s17, 128  ;;  %s743_s10 = scalar_lea.hbm %s1052_s5, 256 }
 0x301   : > { %p740_p6 = scmp.ne.s32.totalorder %s532_s17, %s739_s14  ;;  %p744_p10 = scmp.lt.s32.totalorder %s532_s17, %s1052_s5 }
 0x302   : > { %p745_p11 = scmp.lt.s32.totalorder %s743_s10, %s739_s14 }
 0x303   : > { %p741_p7 = pnand %p740_p6, %p876_p4 }
 0x304   : > { %p746_p12 = por %p745_p11, %p744_p10 }
 0x305   : > { %p742_p9 = pneg %p741_p7 }
 0x307   : > { %p747_p13 = pnand %p746_p12, %p742_p9 }
 0x309   : > { %750 = shalt.err (!%p747_p13)
}
 0x30a   : > { %664 = dma.vmem_to_hbm [thread:$0]  (%p876_p4), %s1004_s13, 128, %s532_s17, %s521_s24  }
 0x30b PF: > { %p670_p0 = scmp.ge.s32.totalorder %s801_s23, 2  ;;  %s546_s15 = sand.u32 1, %s781_s18  }
 0x30c   : > { %s547_s27 = scalar_lea.sflag [#allocation5], %s546_s15 }
 0x30d   : > { %p667_p1 = pnand %p670_p0, %p883_p8 }
 0x30f   : > { %p668_p2 = pneg %p667_p1 }
 0x311   : > { %776 = dma.done.wait (%p668_p2), %s547_s27, 128  }
 0x312   : > { %778 = vsyncadd (%p668_p2), %s547_s27, 4294967168  ;;  %s18_s23 = sadd.s32 1, %s801_s23   ;;  %s1055_s18 = smov %s785_s19 }
 0x313   : > { %p15_p3 = scmp.ge.s32.totalorder %s18_s23, 4   ;;  %s1056_s19 = smov %s789_s20 }
 0x314   : > { %s1057_s20 = smov %s889_s6  ;;  %s1058_s21 = smov %s797_s22 }
 0x315   : > { %s1059_s22 = smov %s1061_s26  ;;  %17 = sbr.rel (!%p15_p3) target bundleno = 4 (0x4), region = 92 }
 0x31a   :  { %552 = vsyncpa [#allocation5], 1 }
 0x31b   :  { %554 = vsyncpa [#allocation5 + $0x1], 1 }

</bundles_post_ra>
